<compile_context>
chip_gen: v7x
topology: tpu7x:2x2x1
jax: 0.10.0
libtpu: 0.0.40
codegen_flags: <defaults>
</compile_context>

<pallas_src>
import functools

import jax
import jax.numpy as jnp
from jax import lax
from jax.experimental import pallas as pl
from jax.experimental.pallas import tpu as pltpu


def _round_up(x, m):
    return ((x + m - 1) // m) * m


def _pick_tile(dim, desired, align):
    """Pick a tile size <= desired, multiple of `align`, preferring exact divisors
    of the aligned dim so no padding (and no post-kernel copy) is needed."""
    dim_a = _round_up(dim, align)
    if dim_a <= desired:
        return dim_a
    for t in range(desired, align - 1, -align):
        if dim_a % t == 0:
            return t
    return desired


def _proj_logsoftmax_kernel(x_ref, w_ref, b_ref, o_ref, m_ref, s_ref, *, precision):
    # x_ref: (TM, D)   w_ref: (TV, D)   b_ref: (1, V_pad)  resident
    # o_ref: (TM, V_pad) resident output block
    # m_ref/s_ref: (TM, 1) f32 running max / sum
    j = pl.program_id(1)
    nv = pl.num_programs(1)
    tv = w_ref.shape[0]

    @pl.when(j == 0)
    def _init():
        m_ref[...] = jnp.full(m_ref.shape, -jnp.inf, dtype=jnp.float32)
        s_ref[...] = jnp.zeros(s_ref.shape, dtype=jnp.float32)

    col = pl.multiple_of(j * tv, tv)  # lane-aligned column offset of this V-slab

    # (TM, D) x (TV, D) -> (TM, TV): contract last dim of both (weight kept [V, D],
    # no HBM transpose).  f32 accumulation on the MXU.
    lt = lax.dot_general(
        x_ref[...],
        w_ref[...],
        dimension_numbers=(((1,), (1,)), ((), ())),
        preferred_element_type=jnp.float32,
        precision=precision,
    )
    lt = lt + b_ref[:, pl.ds(col, tv)].astype(jnp.float32)

    # Write raw logits for this vocab slab straight into the resident output
    # block (no separate f32 logits scratch).
    o_ref[:, pl.ds(col, tv)] = lt.astype(o_ref.dtype)

    # online logsumexp update
    m_prev = m_ref[...]
    m_new = jnp.maximum(m_prev, jnp.max(lt, axis=-1, keepdims=True))
    s_ref[...] = s_ref[...] * jnp.exp(m_prev - m_new) + jnp.sum(
        jnp.exp(lt - m_new), axis=-1, keepdims=True
    )
    m_ref[...] = m_new

    @pl.when(j == nv - 1)
    def _finalize():
        lse = m_ref[...] + jnp.log(s_ref[...])
        o_ref[...] = (o_ref[...].astype(jnp.float32) - lse).astype(o_ref.dtype)


def output_projection_layer(x, weight, bias, *, tile_m=256, tile_v=512, precision=None):
    """x: [B, S, D]; weight: [V, D] (PyTorch nn.Linear layout); bias: [V]."""
    B, S, D = x.shape
    V = weight.shape[0]
    M = B * S

    # --- vocab tile: multiple of 128 lanes, prefer exact divisor of V ---
    tile_v = _pick_tile(V, tile_v, 128)
    V_pad = _round_up(V, tile_v)

    # --- generation-aware VMEM budget (v5e/v6e: 128 MiB, v7x: 64 MiB per TC) ---
    try:
        vmem_cap = int(pltpu.get_tpu_info().vmem_capacity_bytes)
    except Exception:  # pragma: no cover - conservative fallback
        vmem_cap = 64 << 20
    vmem_budget = (vmem_cap * 3) // 4

    xb = jnp.dtype(x.dtype).itemsize
    wb = jnp.dtype(weight.dtype).itemsize
    ob = xb

    def vmem_need(tm):
        return (
            2 * tm * D * xb          # x row tile (double-buffered)
            + 2 * tile_v * D * wb    # weight V-slab (double-buffered)
            + 2 * V_pad * 4          # resident bias
            + 2 * tm * V_pad * ob    # resident output block
            + 2 * tm * 128 * 4       # m/s accumulators (lane-padded)
        )

    # --- row tile: fill the 256-wide MXUs on v6e/v7x, shrink if VMEM-tight ---
    tile_m = _pick_tile(M, tile_m, 8)
    while tile_m > 8 and vmem_need(tile_m) > vmem_budget:
        tile_m = max(8, _round_up(tile_m // 2, 8))
    # TODO(synk): if even tile_m=8 does not fit (huge V on v7x), switch to a
    # two-pass scheme: pass 1 computes only the (tile_m,1) LSE, pass 2 recomputes
    # each (tile_m, tile_v) logits tile and writes per-tile output blocks.
    M_pad = _round_up(M, tile_m)

    x2 = x.reshape(M, D)
    if M_pad != M:
        x2 = jnp.pad(x2, ((0, M_pad - M), (0, 0)))

    w = weight  # keep [V, D]; no HBM transpose per call
    b2 = bias.reshape(1, V).astype(jnp.float32)
    if V_pad != V:
        w = jnp.pad(w, ((0, V_pad - V), (0, 0)))
        # padded vocab columns get a very negative bias so they vanish from the LSE
        b2 = jnp.pad(b2, ((0, 0), (0, V_pad - V)), constant_values=-1e30)

    grid = (M_pad // tile_m, V_pad // tile_v)

    need = vmem_need(tile_m)
    vmem_limit = int(min(max(need * 5 // 4, 16 << 20), vmem_budget))
    vmem_limit = max(vmem_limit, need)

    kernel = functools.partial(_proj_logsoftmax_kernel, precision=precision)

    out = pl.pallas_call(
        kernel,
        out_shape=jax.ShapeDtypeStruct((M_pad, V_pad), x.dtype),
        grid_spec=pltpu.PrefetchScalarGridSpec(
            num_scalar_prefetch=0,
            grid=grid,
            in_specs=[
                pl.BlockSpec((tile_m, D), lambda i, j: (i, 0)),   # x rows
                pl.BlockSpec((tile_v, D), lambda i, j: (j, 0)),   # weight V-slab
                pl.BlockSpec((1, V_pad), lambda i, j: (0, 0)),    # whole bias, resident
            ],
            out_specs=pl.BlockSpec((tile_m, V_pad), lambda i, j: (i, 0)),
            scratch_shapes=[
                pltpu.VMEM((tile_m, 1), jnp.float32),  # running max
                pltpu.VMEM((tile_m, 1), jnp.float32),  # running sum
            ],
        ),
        compiler_params=pltpu.CompilerParams(
            dimension_semantics=("parallel", "arbitrary"),
            vmem_limit_bytes=vmem_limit,
        ),
    )(x2, w, b2)

    return out[:M, :V].reshape(B, S, V)


if __name__ == "__main__":
    # small shapes consistent with the module: d_model=32, vocab_size=128
    B, S, D, V = 2, 8, 32, 128

    key = jax.random.PRNGKey(0)
    kx, kw, kb = jax.random.split(key, 3)

    # deterministic parameter init (mimics nn.Linear uniform(-1/sqrt(D), 1/sqrt(D)))
    bound = 1.0 / (D ** 0.5)
    weight = jax.random.uniform(kw, (V, D), jnp.float32, -bound, bound)
    bias = jax.random.uniform(kb, (V,), jnp.float32, -bound, bound)
    x = jax.random.normal(kx, (B, S, D), jnp.float32)

    # f32 exactness demo: HIGHEST precision so the 1e-5 check is meaningful.
    # Production would feed bf16 x/weight (or precision=None) and relax tolerance.
    y = output_projection_layer(x, weight, bias, precision=lax.Precision.HIGHEST)
    y = jax.block_until_ready(y)

    # reference check in plain JAX (same precision as the kernel's matmul)
    ref_logits = jnp.einsum(
        "bsd,vd->bsv", x, weight, precision=lax.Precision.HIGHEST
    ) + bias
    ref = jax.nn.log_softmax(ref_logits, axis=-1)
    assert y.shape == (B, S, V)
    assert jnp.allclose(y, ref, atol=1e-5, rtol=1e-5)
    print("KERNEL_OK")
</pallas_src>

<mosaic_0001>
module attributes {stable_mosaic.version = 11 : i64} {
  func.func @_proj_logsoftmax_kernel(%arg0: i32, %arg1: i32, %arg2: memref<16x32xf32, #tpu.memory_space<vmem>>, %arg3: memref<128x32xf32, #tpu.memory_space<vmem>>, %arg4: memref<1x128xf32, #tpu.memory_space<vmem>>, %arg5: memref<16x128xf32, #tpu.memory_space<vmem>>, %arg6: memref<16x1xf32, #tpu.memory_space<vmem>>, %arg7: memref<16x1xf32, #tpu.memory_space<vmem>>) attributes {dimension_semantics = [#tpu.dimension_semantics<parallel>, #tpu.dimension_semantics<arbitrary>], iteration_bounds = array<i64: 1, 1>, scalar_prefetch = 0 : i64, scratch_operands = 2 : i64, tpu.core_type = #tpu.core_type<tc>, window_params = [{transform_indices = @transform_0, window_bounds = array<i64: 16, 32>}, {transform_indices = @transform_1, window_bounds = array<i64: 128, 32>}, {pipeline_mode = #tpu.pipeline_mode<synchronous>, transform_indices = @transform_2, window_bounds = array<i64: 1, 128>}, {transform_indices = @transform_3, window_bounds = array<i64: 16, 128>}]} {
    %c0_i32 = arith.constant 0 : i32
    %0 = arith.cmpi eq, %arg1, %c0_i32 : i32
    %1 = arith.extui %0 : i1 to i32
    %c0_i32_0 = arith.constant 0 : i32
    %2 = arith.cmpi ne, %1, %c0_i32_0 : i32
    scf.if %2 {
      %cst_18 = arith.constant 0xFF800000 : f32
      %33 = vector.broadcast %cst_18 : f32 to vector<16x1xf32>
      %c0_19 = arith.constant 0 : index
      %c0_20 = arith.constant 0 : index
      %34 = vector.load %arg6[%c0_19, %c0_20] : memref<16x1xf32, #tpu.memory_space<vmem>>, vector<16x1xf32>
      tpu.vector_store %arg6[%c0_19, %c0_20], %33 {strides = array<i32>} : memref<16x1xf32, #tpu.memory_space<vmem>>, vector<16x1xf32>,
      %cst_21 = arith.constant 0.000000e+00 : f32
      %35 = vector.broadcast %cst_21 : f32 to vector<16x1xf32>
      %c0_22 = arith.constant 0 : index
      %c0_23 = arith.constant 0 : index
      %36 = vector.load %arg7[%c0_22, %c0_23] : memref<16x1xf32, #tpu.memory_space<vmem>>, vector<16x1xf32>
      tpu.vector_store %arg7[%c0_22, %c0_23], %35 {strides = array<i32>} : memref<16x1xf32, #tpu.memory_space<vmem>>, vector<16x1xf32>,
    } else {
    }
    %c128_i32 = arith.constant 128 : i32
    %3 = arith.muli %arg1, %c128_i32 : i32
    %4 = tpu.assume_multiple %3, 128 : i32
    %c0 = arith.constant 0 : index
    %c0_1 = arith.constant 0 : index
    %5 = vector.load %arg2[%c0, %c0_1] : memref<16x32xf32, #tpu.memory_space<vmem>>, vector<16x32xf32>
    %c0_2 = arith.constant 0 : index
    %c0_3 = arith.constant 0 : index
    %6 = vector.load %arg3[%c0_2, %c0_3] : memref<128x32xf32, #tpu.memory_space<vmem>>, vector<128x32xf32>
    %cst = arith.constant dense<0.000000e+00> : vector<16x128xf32>
    %7 = tpu.matmul %5, %6, %cst {dimension_numbers = #tpu.dot_dimension_numbers<[1], [1], [0], [0], [0, 0, 1, 0], [], []>, precision = #tpu.contract_precision<fp32>} : vector<16x32xf32>, vector<128x32xf32>, vector<16x128xf32> -> vector<16x128xf32>
    %c0_4 = arith.constant 0 : index
    %8 = arith.index_cast %4 : i32 to index
    %9 = vector.load %arg4[%c0_4, %8] : memref<1x128xf32, #tpu.memory_space<vmem>>, vector<1x128xf32>
    %10 = vector.broadcast %9 : vector<1x128xf32> to vector<16x128xf32>
    %11 = arith.addf %7, %10 : vector<16x128xf32>
    %c0_5 = arith.constant 0 : index
    %12 = arith.index_cast %4 : i32 to index
    %13 = vector.load %arg5[%c0_5, %12] : memref<16x128xf32, #tpu.memory_space<vmem>>, vector<16x128xf32>
    tpu.vector_store %arg5[%c0_5, %12], %11 {strides = array<i32>} : memref<16x128xf32, #tpu.memory_space<vmem>>, vector<16x128xf32>,
    %c0_6 = arith.constant 0 : index
    %c0_7 = arith.constant 0 : index
    %14 = vector.load %arg6[%c0_6, %c0_7] : memref<16x1xf32, #tpu.memory_space<vmem>>, vector<16x1xf32>
    %cst_8 = arith.constant dense<0xFF800000> : vector<16xf32>
    %15 = vector.multi_reduction <maximumf>, %11, %cst_8 [1] : vector<16x128xf32> to vector<16xf32>
    %16 = vector.shape_cast %15 : vector<16xf32> to vector<16x1xf32>
    %17 = arith.maximumf %14, %16 : vector<16x1xf32>
    %c0_9 = arith.constant 0 : index
    %c0_10 = arith.constant 0 : index
    %18 = vector.load %arg7[%c0_9, %c0_10] : memref<16x1xf32, #tpu.memory_space<vmem>>, vector<16x1xf32>
    %19 = arith.subf %14, %17 : vector<16x1xf32>
    %20 = math.exp %19 : vector<16x1xf32>
    %21 = arith.mulf %18, %20 : vector<16x1xf32>
    %22 = vector.broadcast %17 : vector<16x1xf32> to vector<16x128xf32>
    %23 = arith.subf %11, %22 : vector<16x128xf32>
    %24 = math.exp %23 : vector<16x128xf32>
    %cst_11 = arith.constant dense<0.000000e+00> : vector<16xf32>
    %25 = vector.multi_reduction <add>, %24, %cst_11 [1] : vector<16x128xf32> to vector<16xf32>
    %26 = vector.shape_cast %25 : vector<16xf32> to vector<16x1xf32>
    %27 = arith.addf %21, %26 : vector<16x1xf32>
    %c0_12 = arith.constant 0 : index
    %c0_13 = arith.constant 0 : index
    %28 = vector.load %arg7[%c0_12, %c0_13] : memref<16x1xf32, #tpu.memory_space<vmem>>, vector<16x1xf32>
    tpu.vector_store %arg7[%c0_12, %c0_13], %27 {strides = array<i32>} : memref<16x1xf32, #tpu.memory_space<vmem>>, vector<16x1xf32>,
    %c0_14 = arith.constant 0 : index
    %c0_15 = arith.constant 0 : index
    %29 = vector.load %arg6[%c0_14, %c0_15] : memref<16x1xf32, #tpu.memory_space<vmem>>, vector<16x1xf32>
    tpu.vector_store %arg6[%c0_14, %c0_15], %17 {strides = array<i32>} : memref<16x1xf32, #tpu.memory_space<vmem>>, vector<16x1xf32>,
    %c0_i32_16 = arith.constant 0 : i32
    %30 = arith.cmpi eq, %arg1, %c0_i32_16 : i32
    %31 = arith.extui %30 : i1 to i32
    %c0_i32_17 = arith.constant 0 : i32
    %32 = arith.cmpi ne, %31, %c0_i32_17 : i32
    scf.if %32 {
      %c0_18 = arith.constant 0 : index
      %c0_19 = arith.constant 0 : index
      %33 = vector.load %arg6[%c0_18, %c0_19] : memref<16x1xf32, #tpu.memory_space<vmem>>, vector<16x1xf32>
      %c0_20 = arith.constant 0 : index
      %c0_21 = arith.constant 0 : index
      %34 = vector.load %arg7[%c0_20, %c0_21] : memref<16x1xf32, #tpu.memory_space<vmem>>, vector<16x1xf32>
      %35 = math.log %34 : vector<16x1xf32>
      %36 = arith.addf %33, %35 : vector<16x1xf32>
      %c0_22 = arith.constant 0 : index
      %c0_23 = arith.constant 0 : index
      %37 = vector.load %arg5[%c0_22, %c0_23] : memref<16x128xf32, #tpu.memory_space<vmem>>, vector<16x128xf32>
      %38 = vector.broadcast %36 : vector<16x1xf32> to vector<16x128xf32>
      %39 = arith.subf %37, %38 : vector<16x128xf32>
      %c0_24 = arith.constant 0 : index
      %c0_25 = arith.constant 0 : index
      %40 = vector.load %arg5[%c0_24, %c0_25] : memref<16x128xf32, #tpu.memory_space<vmem>>, vector<16x128xf32>
      tpu.vector_store %arg5[%c0_24, %c0_25], %39 {strides = array<i32>} : memref<16x128xf32, #tpu.memory_space<vmem>>, vector<16x128xf32>,
    } else {
    }
    return
  }
  func.func @transform_0(%arg0: i32, %arg1: i32) -> (i32, i32) {
    %c0_i32 = arith.constant 0 : i32
    %c0_i32_0 = arith.constant 0 : i32
    return %arg0, %c0_i32 : i32, i32
  }
  func.func @transform_1(%arg0: i32, %arg1: i32) -> (i32, i32) {
    %c0_i32 = arith.constant 0 : i32
    %c0_i32_0 = arith.constant 0 : i32
    return %arg1, %c0_i32 : i32, i32
  }
  func.func @transform_2(%arg0: i32, %arg1: i32) -> (i32, i32) {
    %c0_i32 = arith.constant 0 : i32
    %c0_i32_0 = arith.constant 0 : i32
    %c0_i32_1 = arith.constant 0 : i32
    return %c0_i32, %c0_i32_0 : i32, i32
  }
  func.func @transform_3(%arg0: i32, %arg1: i32) -> (i32, i32) {
    %c0_i32 = arith.constant 0 : i32
    %c0_i32_0 = arith.constant 0 : i32
    return %arg0, %c0_i32 : i32, i32
  }
}

</mosaic_0001>

<bundles_post_ra>
// kernel: tpu_custom_call.1
= control target key start
LH: loop header
LB: loop body
LE: loop exit
PB: predicated region body
PF: predicated region fallthrough
CT: control target
= control target key end

     0   :  { %vm53_vm0 = vcmask 261120   ;;  %s1783_s0 = inlined_call_operand.vmem [shape: f32[16,32], index: 0, kind: input, shape index: {}]   ;;  %s1784_s1 = inlined_call_operand.vmem [shape: f32[128,32], index: 1, kind: input, shape index: {}]   ;;  %s1785_s2 = inlined_call_operand.vmem [shape: f32[1,128], index: 2, kind: input, shape index: {}]   ;;  %s1786_s3 = inlined_call_operand.hbm [shape: f32[16,128], index: 3, kind: output, shape index: {}]  }
   0x1   :  { %v27_v0 = vld [vmem:[%s1784_s1] sm:$0xff]  ;;  %v28_v1 = vld [vmem:[%s1784_s1 + $0x8] sm:$0xff]  ;;  %v29_v2 = vld [vmem:[%s1784_s1 + $0x10] sm:$0xff] }
   0x2   :  { %v61_v3 = vsel %vm53_vm0, %v27_v0, 0  ;;  %v64_v4 = vsel %vm53_vm0, %v28_v1, 0  ;;  %v30_v5 = vld [vmem:[%s1784_s1 + $0x18] sm:$0xff]  ;;  %v67_v6 = vsel %vm53_vm0, %v29_v2, 0  ;;  %v31_v11 = vld [vmem:[%s1784_s1 + $0x20] sm:$0xff]  ;;  %v32_v12 = vld [vmem:[%s1784_s1 + $0x28] sm:$0xff] }
   0x3   :  { %v109_v7 = vand.u32 4294901760, %v61_v3  ;;  %v112_v8 = vand.u32 4294901760, %v64_v4  ;;  %v70_v9 = vsel %vm53_vm0, %v30_v5, 0  ;;  %v115_v10 = vand.u32 4294901760, %v67_v6  ;;  %v25_v18 = vld [vmem:[%s1783_s0] sm:$0xff] }
   0x4   :  { %v118_v13 = vand.u32 4294901760, %v70_v9  ;;  %v73_v16 = vsel %vm53_vm0, %v31_v11, 0  ;;  %v76_v17 = vsel %vm53_vm0, %v32_v12, 0 }
   0x5   :  { %v1502_v14 = vpack.c.bf16 %v112_v8, %v109_v7 }
   0x6   :  { %v1504_v15 = vpack.c.bf16 %v118_v13, %v115_v10 }
   0x7   :  { %1207 = vmatprep.subr.bf16.mxu1 %v1502_v14  ;;  %1303 = vmatprep.subr.bf16.mxu0 %v1502_v14 }
   0x8   :  { %1209 = vmatpush3.bf16.xpose.msra.mxu1 %v1502_v14  ;;  %1305 = vmatpush3.bf16.xpose.msra.mxu0 %v1502_v14 }
   0x9   :  { %8 = vsyncpa [#allocation5], 0  ;;  %1211 = vmatprep.subr.bf16.mxu1 %v1504_v15  ;;  %1307 = vmatprep.subr.bf16.mxu0 %v1504_v15  ;;  %v121_v19 = vand.u32 4294901760, %v73_v16  ;;  %v124_v20 = vand.u32 4294901760, %v76_v17  ;;  %v33_v21 = vld [vmem:[%s1784_s1 + $0x30] sm:$0xff]  ;;  %v34_v22 = vld [vmem:[%s1784_s1 + $0x38] sm:$0xff]  ;;  %v1562_v45 = vsub.f32 %v61_v3, %v109_v7  ;;  %v1564_v46 = vsub.f32 %v64_v4, %v112_v8 }
   0xa   :  { %v55_v23 = vsel %vm53_vm0, %v25_v18, 0  ;;  %v79_v26 = vsel %vm53_vm0, %v33_v21, 0  ;;  %v82_v27 = vsel %vm53_vm0, %v34_v22, 0  ;;  %v35_v32 = vld [vmem:[%s1784_s1 + $0x40] sm:$0xff]  ;;  %v36_v33 = vld [vmem:[%s1784_s1 + $0x48] sm:$0xff]  ;;  %v37_v41 = vld [vmem:[%s1784_s1 + $0x50] sm:$0xff]  ;;  %v1566_v47 = vsub.f32 %v67_v6, %v115_v10 }
   0xb   :  { %v1524_v24 = vand.u32 4294901760, %v55_v23  ;;  %v1526_v25 = vpack.c.bf16 %v124_v20, %v121_v19  ;;  %v127_v30 = vand.u32 4294901760, %v79_v26  ;;  %v130_v31 = vand.u32 4294901760, %v82_v27  ;;  %v38_v42 = vld [vmem:[%s1784_s1 + $0x58] sm:$0xff]  ;;  %v39_v61 = vld [vmem:[%s1784_s1 + $0x60] sm:$0xff]  ;;  %v40_v62 = vld [vmem:[%s1784_s1 + $0x68] sm:$0xff] }
   0xc   :  { %v85_v37 = vsel %vm53_vm0, %v35_v32, 0  ;;  %v88_v38 = vsel %vm53_vm0, %v36_v33, 0  ;;  %v91_v44 = vsel %vm53_vm0, %v37_v41, 0  ;;  %v1568_v48 = vsub.f32 %v70_v9, %v118_v13  ;;  %v41_v9 = vld [vmem:[%s1784_s1 + $0x70] sm:$0xff]  ;;  %v42_v10 = vld [vmem:[%s1784_s1 + $0x78] sm:$0xff]  ;;  %v26_v12 = vld [vmem:[%s1783_s0 + $0x8] sm:$0xff] }
   0xd   :  { %v1531_v28 = vsub.f32 %v55_v23, %v1524_v24  ;;  %v1545_v36 = vpack.c.bf16 %v130_v31, %v127_v30  ;;  %v133_v39 = vand.u32 4294901760, %v85_v37  ;;  %v136_v40 = vand.u32 4294901760, %v88_v38 }
   0xe   :  { %v94_v49 = vsel %vm53_vm0, %v38_v42, 0  ;;  %v1571_v50 = vsub.f32 %v73_v16, %v121_v19  ;;  %v1573_v51 = vsub.f32 %v76_v17, %v124_v20  ;;  %v1577_v52 = vpack.c.bf16 %v1564_v46, %v1562_v45 }
   0xf   :  { %v191_v29 = vand.u32 4294901760, %v1531_v28  ;;  %v1559_v43 = vpack.c.bf16 %v136_v40, %v133_v39  ;;  %v1581_v53 = vpack.c.bf16 %v1568_v48, %v1566_v47  ;;  %v139_v54 = vand.u32 4294901760, %v91_v44 }
  0x10   :  { %1213 = vmatpush3.bf16.xpose.msra.mxu1 %v1504_v15  ;;  %1309 = vmatpush3.bf16.xpose.msra.mxu0 %v1504_v15  ;;  %v1585_v55 = vsub.f32 %v79_v26, %v127_v30  ;;  %v1587_v56 = vsub.f32 %v82_v27, %v130_v31  ;;  %v142_v57 = vand.u32 4294901760, %v94_v49  ;;  %v1591_v58 = vsub.f32 %v85_v37, %v133_v39 }
  0x11   :  { %1215 = vmatprep.subr.bf16.mxu1 %v1526_v25  ;;  %1311 = vmatprep.subr.bf16.mxu0 %v1526_v25  ;;  %v192_v34 = vsub.f32 %v1531_v28, %v191_v29  ;;  %v1593_v59 = vsub.f32 %v88_v38, %v136_v40  ;;  %v1597_v60 = vpack.c.bf16 %v1573_v51, %v1571_v50  ;;  %v97_v2 = vsel %vm53_vm0, %v39_v61, 0 }
  0x12   :  { %1133 = vmatprep.mubr.f32.mxu0 %v191_v29  ;;  %v1607_v63 = vpack.c.bf16 %v1587_v56, %v1585_v55  ;;  %v1613_v1 = vpack.c.bf16 %v142_v57, %v139_v54  ;;  %v100_v3 = vsel %vm53_vm0, %v40_v62, 0  ;;  %v1617_v4 = vsub.f32 %v91_v44, %v139_v54 }
  0x13   :  { %v193_v35 = vand.u32 4294901760, %v192_v34  ;;  %v1611_v0 = vpack.c.bf16 %v1593_v59, %v1591_v58  ;;  %v1619_v5 = vsub.f32 %v94_v49, %v142_v57  ;;  %v145_v7 = vand.u32 4294901760, %v97_v2 }
  0x14   :  { %v148_v8 = vand.u32 4294901760, %v100_v3  ;;  %v103_v13 = vsel %vm53_vm0, %v41_v9, 0  ;;  %v106_v16 = vsel %vm53_vm0, %v42_v10, 0  ;;  %v58_v19 = vsel %vm53_vm0, %v26_v12, 0 }
  0x15   :  { %1028 = vmatprep.mubr.f32.mxu1 %v193_v35  ;;  %v1625_v6 = vpack.c.bf16 %v1619_v5, %v1617_v4  ;;  %v1642_v17 = vsub.f32 %v97_v2, %v145_v7  ;;  %v151_v21 = vand.u32 4294901760, %v103_v13  ;;  %v154_v22 = vand.u32 4294901760, %v106_v16 }
  0x16   :  { %v1635_v11 = vpack.c.bf16 %v148_v8, %v145_v7  ;;  %v1644_v18 = vsub.f32 %v100_v3, %v148_v8  ;;  %v212_v23 = vand.u32 4294901760, %v1562_v45  ;;  %v219_v26 = vand.u32 4294901760, %v1564_v46 }
  0x17   :  { %v1657_v27 = vand.u32 4294901760, %v58_v19  ;;  %v1659_v29 = vpack.c.bf16 %v154_v22, %v151_v21  ;;  %v1663_v32 = vsub.f32 %v103_v13, %v151_v21  ;;  %v1665_v33 = vsub.f32 %v106_v16, %v154_v22 }
  0x18   :  { %1217 = vmatpush3.bf16.xpose.msra.mxu1 %v1526_v25  ;;  %1313 = vmatpush3.bf16.xpose.msra.mxu0 %v1526_v25  ;;  %v1651_v20 = vpack.c.bf16 %v1644_v18, %v1642_v17  ;;  %v213_v30 = vsub.f32 %v1562_v45, %v212_v23  ;;  %v220_v31 = vsub.f32 %v1564_v46, %v219_v26  ;;  %v226_v39 = vand.u32 4294901760, %v1566_v47 }
  0x19   :  { %1219 = vmatprep.subr.bf16.mxu1 %v1545_v36  ;;  %1315 = vmatprep.subr.bf16.mxu0 %v1545_v36  ;;  %v1668_v34 = vsub.f32 %v58_v19, %v1657_v27  ;;  %v1674_v35 = vpack.c.bf16 %v1665_v33, %v1663_v32  ;;  %v233_v40 = vand.u32 4294901760, %v1568_v48  ;;  %v1334_v44 = vpack.c.bf16 %v219_v26, %v212_v23 }
  0x1a   :  { %v214_v37 = vand.u32 4294901760, %v213_v30  ;;  %v221_v38 = vand.u32 4294901760, %v220_v31  ;;  %v227_v45 = vsub.f32 %v1566_v47, %v226_v39  ;;  %v240_v61 = vand.u32 4294901760, %v1571_v50 }
  0x1b   :  { %v201_v41 = vand.u32 4294901760, %v1668_v34  ;;  %v234_v46 = vsub.f32 %v1568_v48, %v233_v40  ;;  %v247_v62 = vand.u32 4294901760, %v1573_v51  ;;  %v1338_v7 = vpack.c.bf16 %v233_v40, %v226_v39 }
  0x1c   :  { %v1238_v42 = vpack.c.bf16 %v221_v38, %v214_v37  ;;  %v228_v54 = vand.u32 4294901760, %v227_v45  ;;  %v241_v47 = vsub.f32 %v1571_v50, %v240_v61  ;;  %v254_v10 = vand.u32 4294901760, %v1585_v55 }
  0x1d   :  { %v202_v49 = vsub.f32 %v1668_v34, %v201_v41  ;;  %v235_v57 = vand.u32 4294901760, %v234_v46  ;;  %v248_v48 = vsub.f32 %v1573_v51, %v247_v62  ;;  %v261_v12 = vand.u32 4294901760, %v1587_v56 }
  0x1e   :  { %v242_v8 = vand.u32 4294901760, %v241_v47  ;;  %v1342_v50 = vpack.c.bf16 %v247_v62, %v240_v61  ;;  %v255_v51 = vsub.f32 %v1585_v55, %v254_v10  ;;  %v268_v22 = vand.u32 4294901760, %v1591_v58 }
  0x1f   :  { %v203_v2 = vand.u32 4294901760, %v202_v49  ;;  %v1242_v3 = vpack.c.bf16 %v235_v57, %v228_v54  ;;  %v249_v9 = vand.u32 4294901760, %v248_v48  ;;  %v262_v16 = vsub.f32 %v1587_v56, %v261_v12 }
  0x20   :  { %1221 = vmatpush3.bf16.xpose.msra.mxu1 %v1545_v36  ;;  %1317 = vmatpush3.bf16.xpose.msra.mxu0 %v1545_v36  ;;  %v256_v19 = vand.u32 4294901760, %v255_v51  ;;  %v275_v23 = vand.u32 4294901760, %v1593_v59  ;;  %v1346_v30 = vpack.c.bf16 %v261_v12, %v254_v10  ;;  %v269_v31 = vsub.f32 %v1591_v58, %v268_v22 }
  0x21   :  { %1223 = vmatprep.subr.bf16.mxu1 %v1559_v43  ;;  %1319 = vmatprep.subr.bf16.mxu0 %v1559_v43  ;;  %v1246_v13 = vpack.c.bf16 %v249_v9, %v242_v8  ;;  %v263_v21 = vand.u32 4294901760, %v262_v16  ;;  %v282_v38 = vand.u32 4294901760, %v1617_v4  ;;  %v289_v39 = vand.u32 4294901760, %v1619_v5 }
  0x22   :  { %v276_v37 = vsub.f32 %v1593_v59, %v275_v23  ;;  %v270_v55 = vand.u32 4294901760, %v269_v31  ;;  %v296_v45 = vand.u32 4294901760, %v1642_v17  ;;  %v303_v46 = vand.u32 4294901760, %v1644_v18 }
  0x23   :  { %v1250_v26 = vpack.c.bf16 %v263_v21, %v256_v19  ;;  %v1354_v54 = vpack.c.bf16 %v289_v39, %v282_v38  ;;  %v310_v62 = vand.u32 4294901760, %v1663_v32  ;;  %vm19_vm1 = vcmask 7168  }
  0x24   :  { %v277_v56 = vand.u32 4294901760, %v276_v37  ;;  %v297_v57 = vsub.f32 %v1642_v17, %v296_v45  ;;  %v304_v61 = vsub.f32 %v1644_v18, %v303_v46 }
  0x25   :  { %v311_v47 = vsub.f32 %v1663_v32, %v310_v62 }
  0x26   :  { %v1254_v40 = vpack.c.bf16 %v277_v56, %v270_v55 }
  0x27   :  { %v312_v17 = vand.u32 4294901760, %v311_v47 }
  0x28   :  { %1225 = vmatpush3.bf16.xpose.msra.mxu1 %v1559_v43  ;;  %1321 = vmatpush3.bf16.xpose.msra.mxu0 %v1559_v43 }
  0x29   :  { %1227 = vmatprep.subr.bf16.mxu1 %v1613_v1  ;;  %1323 = vmatprep.subr.bf16.mxu0 %v1613_v1 }
  0x30   :  { %1229 = vmatpush3.bf16.xpose.msra.mxu1 %v1613_v1  ;;  %1325 = vmatpush3.bf16.xpose.msra.mxu0 %v1613_v1 }
  0x31   :  { %1231 = vmatprep.subr.bf16.mxu1 %v1635_v11  ;;  %1327 = vmatprep.subr.bf16.mxu0 %v1635_v11 }
  0x38   :  { %1233 = vmatpush3.bf16.xpose.msra.mxu1 %v1635_v11  ;;  %1329 = vmatpush3.bf16.xpose.msra.mxu0 %v1635_v11 }
  0x39   :  { %1235 = vmatprep.subr.bf16.mxu1 %v1659_v29  ;;  %1331 = vmatprep.subr.bf16.mxu0 %v1659_v29 }
  0x40   :  { %1237 = vmatpush3.bf16.xpose.msra.mxu1 %v1659_v29  ;;  %1333 = vmatpush3.bf16.xpose.msra.mxu0 %v1659_v29 }
  0x41   :  { %1239 = vmatprep.subr.bf16.mxu1 %v1238_v42  ;;  %1335 = vmatprep.subr.bf16.mxu0 %v1334_v44 }
  0x47   :  { %1029 = vmatmul.mubr.f32.vlgmr.msra.gmra.mrb[0].mxu1 %v203_v2  ;;  %1134 = vmatmul.mubr.f32.vlgmr.msra.gmra.mrb[0].mxu0 %v201_v41  ;;  %v1350_v41 = vpack.c.bf16 %v275_v23, %v268_v22  ;;  %v317_v2 = vand.u32 4294901760, %v1665_v33 }
  0x48   :  { %1241 = vmatpush3.bf16.xpose.msra.mxu1 %v1238_v42  ;;  %1337 = vmatpush3.bf16.xpose.msra.mxu0 %v1334_v44  ;;  %v283_v42 = vsub.f32 %v1617_v4, %v282_v38  ;;  %v290_v44 = vsub.f32 %v1619_v5, %v289_v39  ;;  %v298_v4 = vand.u32 4294901760, %v297_v57  ;;  %v305_v5 = vand.u32 4294901760, %v304_v61 }
  0x49   :  { %1243 = vmatprep.subr.bf16.mxu1 %v1242_v3  ;;  %1339 = vmatprep.subr.bf16.mxu0 %v1338_v7  ;;  %v318_v48 = vsub.f32 %v1665_v33, %v317_v2  ;;  %v1362_v9 = vpack.c.bf16 %v317_v2, %v310_v62 }
  0x4a   :  { %1063 = vmatprep.mubr.f32.mxu1 %v1524_v24  ;;  %1168 = vmatprep.mubr.f32.mxu0 %v1524_v24  ;;  %v284_v58 = vand.u32 4294901760, %v283_v42  ;;  %v291_v59 = vand.u32 4294901760, %v290_v44 }
  0x4b   :  { %v319_v18 = vand.u32 4294901760, %v318_v48 }
  0x4c   :  { %v1258_v49 = vpack.c.bf16 %v291_v59, %v284_v58 }
  0x4d   :  { %v1266_v8 = vpack.c.bf16 %v319_v18, %v312_v17 }
  0x50   :  { %1245 = vmatpush3.bf16.xpose.msra.mxu1 %v1242_v3  ;;  %1341 = vmatpush3.bf16.xpose.msra.mxu0 %v1338_v7  ;;  %v1262_v3 = vpack.c.bf16 %v305_v5, %v298_v4  ;;  %v1358_v7 = vpack.c.bf16 %v303_v46, %v296_v45 }
  0x51   :  { %1247 = vmatprep.subr.bf16.mxu1 %v1246_v13  ;;  %1343 = vmatprep.subr.bf16.mxu0 %v1342_v50 }
  0x58   :  { %1249 = vmatpush3.bf16.xpose.msra.mxu1 %v1246_v13  ;;  %1345 = vmatpush3.bf16.xpose.msra.mxu0 %v1342_v50 }
  0x59   :  { %1251 = vmatprep.subr.bf16.mxu1 %v1250_v26  ;;  %1347 = vmatprep.subr.bf16.mxu0 %v1346_v30 }
  0x60   :  { %1253 = vmatpush3.bf16.xpose.msra.mxu1 %v1250_v26  ;;  %1349 = vmatpush3.bf16.xpose.msra.mxu0 %v1346_v30 }
  0x61   :  { %1255 = vmatprep.subr.bf16.mxu1 %v1254_v40  ;;  %1351 = vmatprep.subr.bf16.mxu0 %v1350_v41 }
  0x68   :  { %1257 = vmatpush3.bf16.xpose.msra.mxu1 %v1254_v40  ;;  %1353 = vmatpush3.bf16.xpose.msra.mxu0 %v1350_v41 }
  0x69   :  { %1259 = vmatprep.subr.bf16.mxu1 %v1258_v49  ;;  %1355 = vmatprep.subr.bf16.mxu0 %v1354_v54 }
  0x70   :  { %1261 = vmatpush3.bf16.xpose.msra.mxu1 %v1258_v49  ;;  %1357 = vmatpush3.bf16.xpose.msra.mxu0 %v1354_v54 }
  0x71   :  { %1263 = vmatprep.subr.bf16.mxu1 %v1262_v3  ;;  %1359 = vmatprep.subr.bf16.mxu0 %v1358_v7 }
  0x78   :  { %1265 = vmatpush3.bf16.xpose.msra.mxu1 %v1262_v3  ;;  %1361 = vmatpush3.bf16.xpose.msra.mxu0 %v1358_v7 }
  0x79   :  { %1267 = vmatprep.subr.bf16.mxu1 %v1266_v8  ;;  %1363 = vmatprep.subr.bf16.mxu0 %v1362_v9 }
  0x80   :  { %1269 = vmatpush3.bf16.xpose.msra.mxu1 %v1266_v8  ;;  %1365 = vmatpush3.bf16.xpose.msra.mxu0 %v1362_v9 }
  0x81   :  { %1271 = vmatprep.subr.bf16.mxu1 %v1577_v52  ;;  %1367 = vmatprep.subr.bf16.mxu0 %v1502_v14 }
  0x87   :  { %1064 = vmatmul.mubr.f32.vlgmr.msra.gmra.mrb[0].mxu1 %v1657_v27  ;;  %1169 = vmatmul.mubr.f32.vlgmr.msra.gmra.mrb[0].mxu0 %v1657_v27 }
  0x88   :  { %1273 = vmatpush3.bf16.xpose.msra.mxu1 %v1577_v52  ;;  %1369 = vmatpush3.bf16.xpose.msra.mxu0 %v1502_v14  ;;  %v887_v14 = vld [vmem:[%s1785_s2] ss:$0 sm:$0xff]  ;;  %s1457_s2 = smov [#allocation4]  }
  0x89   :  { %1275 = vmatprep.subr.bf16.mxu1 %v1581_v53  ;;  %1371 = vmatprep.subr.bf16.mxu0 %v1504_v15  ;;  %s874_s21 = sshll.u32 %s1457_s2, 4  ;;  %s875_s21 = int_to_ptr.vmem [resolvable:$true] %s874_s21 }
  0x8a   :  { %1098 = vmatprep.mubr.f32.mxu1 %v1531_v28  ;;  %1203 = vmatprep.mubr.f32.mxu0 %v1524_v24  ;;  %s1430_s22 = scalar_lea.vmem %s875_s21, 256  ;;  %p1435_p1 = scmp.lt.s32.totalorder %s875_s21, %s875_s21 }
  0x8b   :  { %p1431_p0 = scmp.ne.s32.totalorder %s875_s21, %s1430_s22  ;;  %p1436_p2 = scmp.lt.s32.totalorder %s1430_s22, %s1430_s22 }
  0x8d   :  { %p1437_p3 = por %p1436_p2, %p1435_p1 }
  0x8f   :  { %p1438_p4 = pnand %p1437_p3, %p1431_p0 }
  0x90   :  { %1277 = vmatpush3.bf16.xpose.msra.mxu1 %v1581_v53  ;;  %1373 = vmatpush3.bf16.xpose.msra.mxu0 %v1504_v15 }
  0x91   :  { %1279 = vmatprep.subr.bf16.mxu1 %v1597_v60  ;;  %1375 = vmatprep.subr.bf16.mxu0 %v1526_v25 }
  0x98   :  { %1281 = vmatpush3.bf16.xpose.msra.mxu1 %v1597_v60  ;;  %1377 = vmatpush3.bf16.xpose.msra.mxu0 %v1526_v25  ;;  %v1454_v60 = vmov -inf  }
  0x99   :  { %1283 = vmatprep.subr.bf16.mxu1 %v1607_v63  ;;  %1379 = vmatprep.subr.bf16.mxu0 %v1545_v36  ;;  %20 = vst.msk [vmem:[#allocation2] sm:$0xff] %vm19_vm1, %v1454_v60  ;;  %21 = vst.msk [vmem:[#allocation2 + $0x8] sm:$0xff] %vm19_vm1, %v1454_v60 }
  0xa0   :  { %1285 = vmatpush3.bf16.xpose.msra.mxu1 %v1607_v63  ;;  %1381 = vmatpush3.bf16.xpose.msra.mxu0 %v1545_v36  ;;  %v1455_v63 = vmov 0  }
  0xa1   :  { %1287 = vmatprep.subr.bf16.mxu1 %v1611_v0  ;;  %1383 = vmatprep.subr.bf16.mxu0 %v1559_v43 }
  0xa2   :  { %1416 = vset.pattern.permute.xlu1 %v1455_v63  ;;  %1417 = vset.pattern.permute.xlu0 %v1455_v63 }
  0xa8   :  { %1289 = vmatpush3.bf16.xpose.msra.mxu1 %v1611_v0  ;;  %1385 = vmatpush3.bf16.xpose.msra.mxu0 %v1559_v43  ;;  %v1456_v0 = vmov 0.0  }
  0xa9   :  { %1291 = vmatprep.subr.bf16.mxu1 %v1625_v6  ;;  %1387 = vmatprep.subr.bf16.mxu0 %v1613_v1  ;;  %22 = vst.msk [vmem:[#allocation3] sm:$0xff] %vm19_vm1, %v1456_v0  ;;  %23 = vst.msk [vmem:[#allocation3 + $0x8] sm:$0xff] %vm19_vm1, %v1456_v0 }
  0xb0   :  { %1293 = vmatpush3.bf16.xpose.msra.mxu1 %v1625_v6  ;;  %1389 = vmatpush3.bf16.xpose.msra.mxu0 %v1613_v1  ;;  %v795_v1 = vld [vmem:[#allocation2] sm:$0xff]  ;;  %v803_v23 = vld [vmem:[#allocation3] sm:$0xff]  ;;  %v804_v37 = vld [vmem:[#allocation3 + $0x8] sm:$0xff] }
  0xb1   :  { %1295 = vmatprep.subr.bf16.mxu1 %v1651_v20  ;;  %1391 = vmatprep.subr.bf16.mxu0 %v1635_v11 }
  0xb8   :  { %1297 = vmatpush3.bf16.xpose.msra.mxu1 %v1651_v20  ;;  %1393 = vmatpush3.bf16.xpose.msra.mxu0 %v1635_v11  ;;  %v796_v20 = vld [vmem:[#allocation2 + $0x8] sm:$0xff] }
  0xb9   :  { %1299 = vmatprep.subr.bf16.mxu1 %v1674_v35  ;;  %1395 = vmatprep.subr.bf16.mxu0 %v1659_v29 }
  0xc0   :  { %1301 = vmatpush3.bf16.xpose.msra.mxu1 %v1674_v35  ;;  %1397 = vmatpush3.bf16.xpose.msra.mxu0 %v1659_v29 }
  0xc7   :  { %1099 = vmatmul.mubr.f32.vlgmr.msra.gmra.mrb[0].mxu1 %v1668_v34  ;;  %1204 = vmatmul.mubr.f32.vlgmr.msra.gmra.mrb[0].mxu0 %v1657_v27 }
 0x19a   :  { %v1100_v15 = vpop.f32.mrb[0].mxu1  ;;  %v1205_v24 = vpop.f32.mrb[0].mxu0 }
 0x19b   :  { %v1398_v25 = vadd.f32 %v1100_v15, %v887_v14  ;;  %v466_v28 = vpop.f32.mrb[1].mxu1  ;;  %v782_v36 = vpop.f32.mrb[1].mxu0 }
 0x19c   :  { %v1400_v43 = vadd.f32 %v887_v14, %v466_v28 }
 0x19d   :  { %v1753_v52 = vadd.f32 %v1398_v25, %v1205_v24 }
 0x19e   :  { %v1755_v53 = vadd.f32 %v1400_v43, %v782_v36 }
 0x1a0   :  { %797 = vmax.xlane.f32.xlu0 %v1755_v53 }
 0x1a4   :  { %799 = vmax.xlane.f32.xlu0 %v1753_v52 }
 0x22d   :  { %v798_v6 = vpop.xlane.xlu0 %797 }
 0x22e   :  { %v801_v11 = vmax.f32 %v795_v1, %v798_v6 }
 0x230   :  { %v805_v27 = vsub.f32 %v795_v1, %v801_v11  ;;  %838 = vst.msk [vmem:[#allocation2] sm:$0xff] %vm19_vm1, %v801_v11  ;;  %815 = vperm.xlu1 %1416, %v801_v11  }
 0x231   :  { %v800_v29 = vpop.xlane.xlu0 %799 }
 0x232   :  { %v802_v32 = vmax.f32 %v796_v20, %v800_v29  ;;  %v807_v19 = vmul.f32 1.442695, %v805_v27 }
 0x234   :  { %v806_v33 = vsub.f32 %v796_v20, %v802_v32  ;;  %839 = vst.msk [vmem:[#allocation2 + $0x8] sm:$0xff] %vm19_vm1, %v802_v32  ;;  %820 = vperm.xlu1 %1416, %v802_v32  }
 0x236   :  { %v809_v21 = vmul.f32 1.442695, %v806_v33 }
 0x237   :  { %v843_v58 = vld [vmem:[#allocation2] sm:$0xff] }
 0x23b   :  { %v844_v49 = vld [vmem:[#allocation2 + $0x8] sm:$0xff] }
 0x2af   :  { %v816_v34 = vpop.permute.xlu1 %815 }
 0x2b0   :  { %v823_v35 = vsub.f32 %v1755_v53, %v816_v34 }
 0x2b2   :  { %v825_v10 = vmul.f32 1.442695, %v823_v35 }
 0x2b3   :  { %v821_v12 = vpop.permute.xlu1 %820 }
 0x2b4   :  { %1418 = vpow2.f32 %v825_v10  ;;  %v824_v13 = vsub.f32 %v1753_v52, %v821_v12 }
 0x2b6   :  { %v827_v50 = vmul.f32 1.442695, %v824_v13 }
 0x2b8   :  { %1420 = vpow2.f32 %v827_v50 }
 0x2b9   :  { %1422 = vpow2.f32 %v807_v19 }
 0x2ba   :  { %1424 = vpow2.f32 %v809_v21 }
 0x2be   :  { %v1419_v51 = vpop.eup %1418 }
 0x2bf   :  { %829 = vadd.xlane.f32.xlu0 %v1419_v51 }
 0x2c2   :  { %v1421_v16 = vpop.eup %1420 }
 0x2c3   :  { %831 = vadd.xlane.f32.xlu1 %v1421_v16  ;;  %v1423_v22 = vpop.eup %1422 }
 0x2c4   :  { %v811_v26 = vmul.f32 %v1423_v22, %v803_v23  ;;  %v1425_v30 = vpop.eup %1424 }
 0x2c5   :  { %v812_v56 = vmul.f32 %v1425_v30, %v804_v37 }
 0x34c   :  { %v830_v31 = vpop.xlane.xlu0 %829 }
 0x34d   :  { %v833_v55 = vadd.f32 %v830_v31, %v811_v26 }
 0x34f   :  { %836 = vst.msk [vmem:[#allocation3] sm:$0xff] %vm19_vm1, %v833_v55 }
 0x350   :  { %v832_v38 = vpop.xlane.xlu1 %831 }
 0x351   :  { %v834_v39 = vadd.f32 %v832_v38, %v812_v56 }
 0x353   :  { %837 = vst.msk [vmem:[#allocation3 + $0x8] sm:$0xff] %vm19_vm1, %v834_v39 }
 0x356   :  { %v845_v40 = vld [vmem:[#allocation3] sm:$0xff] }
 0x357   :  { %1426 = vlog2.f32 %v845_v40 }
 0x35a   :  { %v846_v41 = vld [vmem:[#allocation3 + $0x8] sm:$0xff] }
 0x35b   :  { %1428 = vlog2.f32 %v846_v41 }
 0x361   :  { %v1427_v42 = vpop.eup %1426 }
 0x362   :  { %v848_v44 = vmul.f32 0.6931472, %v1427_v42 }
 0x364   :  { %v851_v59 = vadd.f32 %v848_v44, %v843_v58 }
 0x365   :  { %v1429_v45 = vpop.eup %1428 }
 0x366   :  { %857 = vperm.xlu0 %1417, %v851_v59   ;;  %v850_v46 = vmul.f32 0.6931472, %v1429_v45 }
 0x368   :  { %v852_v54 = vadd.f32 %v850_v46, %v844_v49 }
 0x36a   :  { %862 = vperm.xlu1 %1416, %v852_v54  }
 0x3e5   :  { %v858_v57 = vpop.permute.xlu0 %857 }
 0x3e6   :  { %v865_v61 = vsub.f32 %v1755_v53, %v858_v57 }
 0x3e8   :  { %867 = vst [vmem:[#allocation4] sm:$0xff] %v865_v61 }
 0x3e9   :  { %v863_v4 = vpop.permute.xlu1 %862 }
 0x3ea   :  { %v866_v5 = vsub.f32 %v1753_v52, %v863_v4 }
 0x3ec   :  { %868 = vst [vmem:[#allocation4 + $0x8] sm:$0xff] %v866_v5 }
 0x3ed   :  { %1441 = shalt.err (!%p1438_p4)
}
 0x3ee   :  { %s1442_s25 = scalar_lea.hbm %s1786_s3, 256 }
 0x3ef   :  { %p1443_p5 = scmp.ne.s32.totalorder %s1786_s3, %s1442_s25  ;;  %p1446_p6 = scmp.lt.u32.totalorder %s1442_s25, %s1786_s3 }
 0x3f1   :  { %p1448_p7 = pnand %p1446_p6, %p1443_p5 }
 0x3f3   :  { %1451 = shalt.err (!%p1448_p7)
}
 0x3f4   :  { %s1458_s30 = smov 128   ;;  %s1459_s4 = smov 8  }
 0x3f5   :  { %880 = dma.vmem_to_hbm [thread:$0]  %s875_s21, 256, %s1786_s3, [#allocation5], %s1458_s30, %s1458_s30, %s1459_s4  }
 0x3f6   :  { %1452 = dma.done.wait [#allocation5], 256  }
 0x3f7   :  { %1453 = vsyncadd [#allocation5], 4294967040 }
 0x3f8   :  { %884 = vsyncpa [#allocation5], 1 }

</bundles_post_ra>
